<compile_context>
chip_gen: v6e
topology: v6e:2x2x1
jax: 0.10.0
libtpu: 0.0.40
codegen_flags: <defaults>
</compile_context>

<pallas_src>
import functools
import math

import jax
import jax.numpy as jnp
from jax.experimental import pallas as pl
from jax.experimental.pallas import tpu as pltpu

EMBED_DIM = 128
TANH_CLIP = 10.0  # only used by the reference; monotone -> dropped in-kernel


def _action_reselector_kernel(city_ref, agent_ref, w_ref, out_ref):
    TB, C, D = city_ref.shape
    A = agent_ref.shape[1]
    cdt = w_ref.dtype  # compute dtype (bf16 by default, f32 path available)

    # Agent-side projection: k = agent @ (Wq @ Wk^T)^T as one (TB*A, D) @ (D, D) MXU
    # matmul.  The reshape collapses leading dims of an f32 (TB, A, D) tile with A
    # sublane-aligned, so it is layout-free; the downcast happens after the reshape.
    agent2d = agent_ref[...].reshape(TB * A, D)
    k = jnp.dot(agent2d.astype(cdt), w_ref[...],
                preferred_element_type=jnp.float32)
    k = k.astype(cdt).reshape(TB, A, D)

    # Batched QK^T, contracting the embedding axis directly (no transpose of k).
    u = jax.lax.dot_general(
        city_ref[...].astype(cdt), k,
        dimension_numbers=(((2,), (2,)), ((0,), (0,))),
        preferred_element_type=jnp.float32)          # (TB, C, A) f32

    # NOTE: the module applies u = 10*tanh(u / sqrt(D)) before argmax; both transforms
    # are strictly monotone so the argmax is unchanged -> intentionally omitted.

    # argmax over agents, first occurrence on ties (matches torch/jnp argmax).
    max_val = jnp.max(u, axis=-1, keepdims=True)            # (TB, C, 1)
    idx = jax.lax.broadcasted_iota(jnp.int32, u.shape, 2)   # (TB, C, A)
    sel = jnp.where(u == max_val, idx, jnp.int32(A))
    res = jnp.min(sel, axis=-1).astype(jnp.int32)           # (TB, C)

    # Lane-dense store: one (1, TB*C) int32 row per grid step.
    out_ref[...] = res.reshape(1, TB * C)


def _pick_batch_tile(B, C, A, D, in_itemsize, compute_itemsize,
                     vmem_budget_bytes=20 << 20, max_batch_tile=None):
    """Largest divisor of B whose per-step VMEM footprint (double-buffered inputs,
    resident fused weight, in-kernel projection / cast / logits intermediates,
    double-buffered output) fits a conservative budget.  Divisors that make the
    output block fully lane-dense (TB*C % 128 == 0) are preferred."""

    def vmem_use(tb):
        inputs = 2 * tb * (C + A) * D * in_itemsize       # double-buffered city+agent
        weight = 2 * D * D * compute_itemsize              # resident fused W
        k_proj = tb * A * D * (4 + compute_itemsize)       # f32 acc + compute-dtype copy
        casts = tb * (C + A) * D * compute_itemsize        # in-kernel downcasts
        u_mat = tb * C * A * 4                              # f32 logits
        out = 2 * tb * C * 4                                # double-buffered output
        return inputs + weight + k_proj + casts + u_mat + out

    cap = B if max_batch_tile is None else max(1, min(B, max_batch_tile))
    divs = [d for d in range(1, cap + 1)
            if B % d == 0 and vmem_use(d) <= vmem_budget_bytes]
    if not divs:
        return 1
    lane_dense = [d for d in divs if (d * C) % 128 == 0]
    return max(lane_dense) if lane_dense else max(divs)


@functools.partial(jax.jit, static_argnames=("compute_dtype", "max_batch_tile"))
def action_reselector(agent_embed, city_embed, w_query, w_key,
                      compute_dtype=jnp.bfloat16, max_batch_tile=None):
    """agent_embed: (B, A, D), city_embed: (B, C, D) -> (B, C) int32 agent indices."""
    B, A, D = agent_embed.shape
    _, C, _ = city_embed.shape
    assert D == EMBED_DIM
    assert C % 8 == 0, "C must be sublane-aligned"
    assert A % 8 == 0, "A must be sublane-aligned for the in-kernel agent reshape"

    # Fuse the two projections once:  u = city @ (Wq @ Wk^T) @ agent^T.  The kernel
    # applies the transposed fused weight on the agent side:  k = agent @ (Wk @ Wq^T).
    w_fused_t = jnp.dot(w_key, w_query.T,
                        preferred_element_type=jnp.float32).astype(compute_dtype)

    in_itemsize = jnp.dtype(agent_embed.dtype).itemsize
    compute_itemsize = jnp.dtype(compute_dtype).itemsize
    TB = _pick_batch_tile(B, C, A, D, in_itemsize, compute_itemsize,
                          max_batch_tile=max_batch_tile)
    nb = B // TB

    cost = pl.CostEstimate(
        flops=2 * B * A * D * D + 2 * B * C * A * D,
        transcendentals=0,
        bytes_accessed=B * (C + A) * D * in_itemsize
                       + D * D * compute_itemsize + B * C * 4)

    out = pl.pallas_call(
        _action_reselector_kernel,
        out_shape=jax.ShapeDtypeStruct((nb, TB * C), jnp.int32),
        grid_spec=pltpu.PrefetchScalarGridSpec(
            num_scalar_prefetch=0,
            grid=(nb,),
            in_specs=[
                pl.BlockSpec((TB, C, D), lambda b: (b, 0, 0)),   # city_embed block
                pl.BlockSpec((TB, A, D), lambda b: (b, 0, 0)),   # agent_embed block
                pl.BlockSpec((D, D), lambda b: (0, 0)),          # fused W^T (resident)
            ],
            out_specs=pl.BlockSpec((1, TB * C), lambda b: (b, 0)),
        ),
        compiler_params=pltpu.CompilerParams(
            dimension_semantics=("parallel",),
            vmem_limit_bytes=48 * 1024 * 1024),
        cost_estimate=cost,
    )(city_embed, agent_embed, w_fused_t)

    # (nb, TB*C) row-major == (B, C) row-major, so this reshape is a pure view change.
    return out.reshape(B, C)


def _reference(agent_embed, city_embed, w_query, w_key):
    """Faithful f32 reproduction of the PyTorch forward pass."""
    hp = jax.lax.Precision.HIGHEST
    q = jnp.einsum("bcd,de->bce", city_embed, w_query, precision=hp)
    k = jnp.einsum("bad,de->bae", agent_embed, w_key, precision=hp)
    u = jnp.einsum("bce,bae->bca", q, k, precision=hp) / math.sqrt(EMBED_DIM)
    u = TANH_CLIP * jnp.tanh(u)
    return jnp.argmax(u, axis=-1).astype(jnp.int32)


def _reference_same_precision(agent_embed, city_embed, w_query, w_key, compute_dtype):
    """Mirrors the kernel's fused-weight / reduced-precision arithmetic step by step."""
    w_t = jnp.dot(w_key, w_query.T,
                  preferred_element_type=jnp.float32).astype(compute_dtype)
    k = jnp.einsum("bae,ed->bad", agent_embed.astype(compute_dtype), w_t,
                   preferred_element_type=jnp.float32).astype(compute_dtype)
    u = jnp.einsum("bcd,bad->bca", city_embed.astype(compute_dtype), k,
                   preferred_element_type=jnp.float32)
    return jnp.argmax(u, axis=-1).astype(jnp.int32)


if __name__ == "__main__":
    key = jax.random.PRNGKey(0)
    k_agent, k_city, k_wq, k_wk = jax.random.split(key, 4)

    B, A, C, D = 8, 8, 16, EMBED_DIM
    agent_embed = jax.random.normal(k_agent, (B, A, D), dtype=jnp.float32)
    city_embed = jax.random.normal(k_city, (B, C, D), dtype=jnp.float32)

    # SingleHeadAttention.init_parameters(): uniform(-1/sqrt(D), 1/sqrt(D)).
    bound = 1.0 / math.sqrt(D)
    w_query = jax.random.uniform(k_wq, (D, D), jnp.float32, -bound, bound)
    w_key = jax.random.uniform(k_wk, (D, D), jnp.float32, -bound, bound)

    ref_f32 = _reference(agent_embed, city_embed, w_query, w_key)

    # Full-precision kernel path vs faithful f32 reference (tolerant check: the fused-W
    # reassociation / matmul precision mode may perturb exact near-ties).
    out_f32 = jax.block_until_ready(
        action_reselector(agent_embed, city_embed, w_query, w_key,
                          compute_dtype=jnp.float32))
    assert out_f32.shape == (B, C) and out_f32.dtype == jnp.int32
    assert float(jnp.mean((out_f32 == ref_f32).astype(jnp.float32))) >= 0.9, \
        "f32 Pallas output disagrees with the f32 reference"

    # Fast bf16 path (default, single lane-dense grid step at this shape): must agree
    # with the same-precision mirror (exact up to floating-point ties).
    out_bf16 = jax.block_until_ready(
        action_reselector(agent_embed, city_embed, w_query, w_key))
    ref_bf16 = _reference_same_precision(agent_embed, city_embed, w_query, w_key,
                                         jnp.bfloat16)
    assert out_bf16.shape == (B, C) and out_bf16.dtype == jnp.int32
    assert float(jnp.mean((out_bf16 == ref_bf16).astype(jnp.float32))) >= 0.95, \
        "bf16 Pallas output mismatch vs same-precision reference"
    # Semantic sanity: bf16 logits should almost always pick the same agent as f32.
    assert float(jnp.mean((out_bf16 == ref_f32).astype(jnp.float32))) >= 0.85

    # Multi-step grid path (nb=2): exercises batch tiling + the row-blocked output.
    out_multi = jax.block_until_ready(
        action_reselector(agent_embed, city_embed, w_query, w_key, max_batch_tile=4))
    assert out_multi.shape == (B, C) and out_multi.dtype == jnp.int32
    assert bool(jnp.all(out_multi == out_bf16)), \
        "tiled (nb=2) result differs from single-step result"

    print("KERNEL_OK")
</pallas_src>

<mosaic_0001>
module attributes {stable_mosaic.version = 11 : i64} {
  func.func @_action_reselector_kernel(%arg0: i32, %arg1: memref<8x16x128xf32, #tpu.memory_space<vmem>>, %arg2: memref<8x8x128xf32, #tpu.memory_space<vmem>>, %arg3: memref<128x128xf32, #tpu.memory_space<vmem>>, %arg4: memref<1x128xi32, #tpu.memory_space<vmem>>) attributes {dimension_semantics = [#tpu.dimension_semantics<parallel>], iteration_bounds = array<i64: 1>, scalar_prefetch = 0 : i64, scratch_operands = 0 : i64, tpu.core_type = #tpu.core_type<tc>, window_params = [{transform_indices = @transform_0, window_bounds = array<i64: 8, 16, 128>}, {transform_indices = @transform_1, window_bounds = array<i64: 8, 8, 128>}, {pipeline_mode = #tpu.pipeline_mode<synchronous>, transform_indices = @transform_2, window_bounds = array<i64: 128, 128>}, {transform_indices = @transform_3, window_bounds = array<i64: 1, 128>}]} {
    %c0 = arith.constant 0 : index
    %c0_0 = arith.constant 0 : index
    %c0_1 = arith.constant 0 : index
    %0 = vector.load %arg2[%c0, %c0_0, %c0_1] : memref<8x8x128xf32, #tpu.memory_space<vmem>>, vector<8x8x128xf32>
    %1 = vector.shape_cast %0 : vector<8x8x128xf32> to vector<64x128xf32>
    %c0_2 = arith.constant 0 : index
    %c0_3 = arith.constant 0 : index
    %2 = vector.load %arg3[%c0_2, %c0_3] : memref<128x128xf32, #tpu.memory_space<vmem>>, vector<128x128xf32>
    %cst = arith.constant dense<0.000000e+00> : vector<64x128xf32>
    %3 = tpu.matmul %1, %2, %cst {dimension_numbers = #tpu.dot_dimension_numbers<[1], [0], [0], [1], [0, 0, 1, 1], [], []>} : vector<64x128xf32>, vector<128x128xf32>, vector<64x128xf32> -> vector<64x128xf32>
    %4 = vector.shape_cast %3 : vector<64x128xf32> to vector<8x8x128xf32>
    %c0_4 = arith.constant 0 : index
    %c0_5 = arith.constant 0 : index
    %c0_6 = arith.constant 0 : index
    %5 = vector.load %arg1[%c0_4, %c0_5, %c0_6] : memref<8x16x128xf32, #tpu.memory_space<vmem>>, vector<8x16x128xf32>
    %cst_7 = arith.constant dense<0.000000e+00> : vector<8x16x8xf32>
    %6 = tpu.matmul %5, %4, %cst_7 {dimension_numbers = #tpu.dot_dimension_numbers<[2], [2], [1], [1], [0, 0, 0, 1, 1, 1], [0], [0]>} : vector<8x16x128xf32>, vector<8x8x128xf32>, vector<8x16x8xf32> -> vector<8x16x8xf32>
    %cst_8 = arith.constant dense<0xFF800000> : vector<8x16xf32>
    %7 = vector.multi_reduction <maximumf>, %6, %cst_8 [2] : vector<8x16x8xf32> to vector<8x16xf32>
    %8 = vector.shape_cast %7 : vector<8x16xf32> to vector<8x16x1xf32>
    %9 = tpu.iota {dimensions = array<i32: 2>} : vector<8x16x8xi32>
    %10 = vector.broadcast %8 : vector<8x16x1xf32> to vector<8x16x8xf32>
    %11 = arith.cmpf oeq, %6, %10 : vector<8x16x8xf32>
    %c8_i32 = arith.constant 8 : i32
    %12 = vector.broadcast %c8_i32 : i32 to vector<8x16x8xi32>
    %13 = arith.select %11, %9, %12 : vector<8x16x8xi1>, vector<8x16x8xi32>
    %cst_9 = arith.constant dense<2147483647> : vector<8x16xi32>
    %14 = vector.multi_reduction <minsi>, %13, %cst_9 [2] : vector<8x16x8xi32> to vector<8x16xi32>
    %15 = vector.shape_cast %14 : vector<8x16xi32> to vector<1x128xi32>
    %c0_10 = arith.constant 0 : index
    %c0_11 = arith.constant 0 : index
    %16 = vector.load %arg4[%c0_10, %c0_11] : memref<1x128xi32, #tpu.memory_space<vmem>>, vector<1x128xi32>
    tpu.vector_store %arg4[%c0_10, %c0_11], %15 {strides = array<i32>} : memref<1x128xi32, #tpu.memory_space<vmem>>, vector<1x128xi32>,
    return
  }
  func.func @transform_0(%arg0: i32) -> (i32, i32, i32) {
    %c0_i32 = arith.constant 0 : i32
    %c0_i32_0 = arith.constant 0 : i32
    %c0_i32_1 = arith.constant 0 : i32
    return %arg0, %c0_i32, %c0_i32_0 : i32, i32, i32
  }
  func.func @transform_1(%arg0: i32) -> (i32, i32, i32) {
    %c0_i32 = arith.constant 0 : i32
    %c0_i32_0 = arith.constant 0 : i32
    %c0_i32_1 = arith.constant 0 : i32
    return %arg0, %c0_i32, %c0_i32_0 : i32, i32, i32
  }
  func.func @transform_2(%arg0: i32) -> (i32, i32) {
    %c0_i32 = arith.constant 0 : i32
    %c0_i32_0 = arith.constant 0 : i32
    %c0_i32_1 = arith.constant 0 : i32
    return %c0_i32, %c0_i32_0 : i32, i32
  }
  func.func @transform_3(%arg0: i32) -> (i32, i32) {
    %c0_i32 = arith.constant 0 : i32
    %c0_i32_0 = arith.constant 0 : i32
    return %arg0, %c0_i32 : i32, i32
  }
}

</mosaic_0001>

<bundles_post_ra>
// kernel: action_reselector.1
= control target key start
LH: loop header
LB: loop body
LE: loop exit
PB: predicated region body
PF: predicated region fallthrough
CT: control target
= control target key end

     0   :  { %vm759_vm0 = vcmask 64512   ;;  %s1809_s2 = inlined_call_operand.vmem [shape: f32[128,128], index: 2, kind: input, shape index: {}]   ;;  %s1810_s1 = inlined_call_operand.vmem [shape: f32[8,8,128], index: 1, kind: input, shape index: {}]   ;;  %s1811_s0 = inlined_call_operand.vmem [shape: f32[8,16,128], index: 0, kind: input, shape index: {}]   ;;  %s1812_s3 = inlined_call_operand.vmem [shape: s32[1,128], index: 3, kind: output, shape index: {}]  }
   0x1   :  { %v37_v0 = vld [vmem:[%s1809_s2 + $0x78] sm:$0xff]  ;;  %v36_v1 = vld [vmem:[%s1809_s2 + $0x70] sm:$0xff]  ;;  %v35_v2 = vld [vmem:[%s1809_s2 + $0x68] sm:$0xff] }
   0x2   :  { %1244 = vmatprep.subr.mxu0 %v37_v0  ;;  %v34_v3 = vld [vmem:[%s1809_s2 + $0x60] sm:$0xff]  ;;  %v33_v5 = vld [vmem:[%s1809_s2 + $0x58] sm:$0xff]  ;;  %v32_v6 = vld [vmem:[%s1809_s2 + $0x50] sm:$0xff] }
   0x3   :  { %1245 = vmatpush3.msra.mxu0 %v37_v0  ;;  %v14_v4 = vld [vmem:[%s1810_s1] sm:$0xff]  ;;  %v31_v7 = vld [vmem:[%s1809_s2 + $0x48] sm:$0xff]  ;;  %v29_v9 = vld [vmem:[%s1809_s2 + $0x38] sm:$0xff] }
   0x4   :  { %1246 = vmatprep.subr.mxu0 %v36_v1  ;;  %1276 = vmatprep.mubr.f32.mxu0 %v14_v4  ;;  %v30_v8 = vld [vmem:[%s1809_s2 + $0x40] sm:$0xff]  ;;  %v28_v10 = vld [vmem:[%s1809_s2 + $0x30] sm:$0xff]  ;;  %v27_v11 = vld [vmem:[%s1809_s2 + $0x28] sm:$0xff] }
   0x5   :  { %1247 = vmatpush3.msra.mxu0 %v36_v1  ;;  %v26_v12 = vld [vmem:[%s1809_s2 + $0x20] sm:$0xff]  ;;  %v25_v13 = vld [vmem:[%s1809_s2 + $0x18] sm:$0xff]  ;;  %v24_v14 = vld [vmem:[%s1809_s2 + $0x10] sm:$0xff] }
   0x6   :  { %1248 = vmatprep.subr.mxu0 %v35_v2  ;;  %v23_v15 = vld [vmem:[%s1809_s2 + $0x8] sm:$0xff]  ;;  %v22_v16 = vld [vmem:[%s1809_s2] sm:$0xff]  ;;  %v16_v18 = vld [vmem:[%s1810_s1 + $0x10] sm:$0xff] }
   0x7   :  { %1249 = vmatpush3.msra.mxu0 %v35_v2  ;;  %v15_v17 = vld [vmem:[%s1810_s1 + $0x8] sm:$0xff]  ;;  %v17_v19 = vld [vmem:[%s1810_s1 + $0x18] sm:$0xff]  ;;  %v18_v20 = vld [vmem:[%s1810_s1 + $0x20] sm:$0xff] }
   0x8   :  { %1250 = vmatprep.subr.mxu0 %v34_v3  ;;  %v19_v21 = vld [vmem:[%s1810_s1 + $0x28] sm:$0xff]  ;;  %v20_v22 = vld [vmem:[%s1810_s1 + $0x30] sm:$0xff]  ;;  %v21_v23 = vld [vmem:[%s1810_s1 + $0x38] sm:$0xff] }
   0x9   :  { %1251 = vmatpush3.msra.mxu0 %v34_v3  ;;  %v143_v24 = vld [vmem:[%s1811_s0] sm:$0xff]  ;;  %v144_v27 = vld [vmem:[%s1811_s0 + $0x8] sm:$0xff]  ;;  %v145_v29 = vld [vmem:[%s1811_s0 + $0x10] sm:$0xff] }
   0xa   :  { %1252 = vmatprep.subr.mxu0 %v33_v5  ;;  %1290 = vmatprep.mubr.f32.mxu1 %v143_v24  ;;  %v146_v31 = vld [vmem:[%s1811_s0 + $0x18] sm:$0xff]  ;;  %v147_v32 = vld [vmem:[%s1811_s0 + $0x20] sm:$0xff]  ;;  %v148_v34 = vld [vmem:[%s1811_s0 + $0x28] sm:$0xff] }
   0xb   :  { %1253 = vmatpush3.msra.mxu0 %v33_v5  ;;  %v149_v35 = vld [vmem:[%s1811_s0 + $0x30] sm:$0xff]  ;;  %v150_v37 = vld [vmem:[%s1811_s0 + $0x38] sm:$0xff]  ;;  %v151_v38 = vld [vmem:[%s1811_s0 + $0x40] sm:$0xff] }
   0xc   :  { %1254 = vmatprep.subr.mxu0 %v32_v6  ;;  %v152_v40 = vld [vmem:[%s1811_s0 + $0x48] sm:$0xff]  ;;  %v153_v41 = vld [vmem:[%s1811_s0 + $0x50] sm:$0xff]  ;;  %v154_v43 = vld [vmem:[%s1811_s0 + $0x58] sm:$0xff] }
   0xd   :  { %1255 = vmatpush3.msra.mxu0 %v32_v6  ;;  %v155_v44 = vld [vmem:[%s1811_s0 + $0x60] sm:$0xff]  ;;  %v156_v45 = vld [vmem:[%s1811_s0 + $0x68] sm:$0xff]  ;;  %v157_v46 = vld [vmem:[%s1811_s0 + $0x70] sm:$0xff] }
   0xe   :  { %1256 = vmatprep.subr.mxu0 %v31_v7  ;;  %v158_v47 = vld [vmem:[%s1811_s0 + $0x78] sm:$0xff] }
   0xf   :  { %1257 = vmatpush3.msra.mxu0 %v31_v7 }
  0x10   :  { %1258 = vmatprep.subr.mxu0 %v30_v8 }
  0x11   :  { %1259 = vmatpush3.msra.mxu0 %v30_v8 }
  0x12   :  { %1260 = vmatprep.subr.mxu0 %v29_v9 }
  0x13   :  { %1261 = vmatpush3.msra.mxu0 %v29_v9 }
  0x14   :  { %1262 = vmatprep.subr.mxu0 %v28_v10 }
  0x15   :  { %1263 = vmatpush3.msra.mxu0 %v28_v10 }
  0x16   :  { %1264 = vmatprep.subr.mxu0 %v27_v11 }
  0x17   :  { %1265 = vmatpush3.msra.mxu0 %v27_v11 }
  0x18   :  { %1266 = vmatprep.subr.mxu0 %v26_v12 }
  0x19   :  { %1267 = vmatpush3.msra.mxu0 %v26_v12 }
  0x1a   :  { %1268 = vmatprep.subr.mxu0 %v25_v13 }
  0x1b   :  { %1269 = vmatpush3.msra.mxu0 %v25_v13 }
  0x1c   :  { %1270 = vmatprep.subr.mxu0 %v24_v14 }
  0x1d   :  { %1271 = vmatpush3.msra.mxu0 %v24_v14 }
  0x1e   :  { %1272 = vmatprep.subr.mxu0 %v23_v15 }
  0x1f   :  { %1273 = vmatpush3.msra.mxu0 %v23_v15 }
  0x20   :  { %1274 = vmatprep.subr.mxu0 %v22_v16 }
  0x21   :  { %1275 = vmatpush3.msra.mxu0 %v22_v16  ;;  %v808_v16 = vlaneseq }
  0x22   :  { %1277 = vmatmul.mubr.f32.vlgmr.msra.gmra.mxu0 %v15_v17 }
  0x23   :  { %1279 = vmatprep.mubr.f32.mxu0 %v16_v18  ;;  %v1521_v17 = vand.u32 127, %v808_v16 }
  0x26   :  { %1280 = vmatmul.mubr.f32.gmra.mxu0 %v17_v19 }
  0x27   :  { %1282 = vmatprep.mubr.f32.mxu0 %v18_v20 }
  0x2a   :  { %1283 = vmatmul.mubr.f32.gmra.mxu0 %v19_v21 }
  0x2b   :  { %1285 = vmatprep.mubr.f32.mxu0 %v20_v22 }
  0x2e   :  { %1286 = vmatmul.mubr.f32.gmra.mxu0 %v21_v23 }
  0xe2   :  { %v1278_v25 = vpop.f32.mrf.mxu0 }
  0xe4   :  { %v104_v26 = vpop.f32.mrf.mxu0 }
  0xe5   :  { %1288 = vmatprep.subr.mxu1 %v104_v26 }
  0xe6   :  { %1289 = vmatpush3.xpose.msra.mxu1 %v104_v26  ;;  %v1281_v28 = vpop.f32.mrf.mxu0 }
  0xe7   :  { %1293 = vmatprep.subr.mxu1 %v1278_v25 }
  0xe8   :  { %v114_v30 = vpop.f32.mrf.mxu0 }
  0xe9   :  { %1291 = vmatmul.mubr.f32.vlgmr.msra.gmra.mxu1 %v144_v27 }
  0xea   :  { %1294 = vmatpush3.xpose.msra.mxu1 %v1278_v25  ;;  %1295 = vmatprep.mubr.f32.mxu1 %v145_v29  ;;  %v1284_v33 = vpop.f32.mrf.mxu0 }
  0xeb   :  { %1298 = vmatprep.subr.mxu1 %v114_v30 }
  0xec   :  { %v124_v36 = vpop.f32.mrf.mxu0 }
  0xed   :  { %1296 = vmatmul.mubr.f32.vlgmr.msra.gmra.mxu1 %v146_v31 }
  0xee   :  { %1299 = vmatpush3.xpose.msra.mxu1 %v114_v30  ;;  %1300 = vmatprep.mubr.f32.mxu1 %v147_v32  ;;  %v1287_v39 = vpop.f32.mrf.mxu0 }
  0xef   :  { %1303 = vmatprep.subr.mxu1 %v1281_v28 }
  0xf0   :  { %v134_v42 = vpop.f32.mrf.mxu0 }
  0xf1   :  { %1301 = vmatmul.mubr.f32.vlgmr.msra.gmra.mxu1 %v148_v34 }
  0xf2   :  { %1304 = vmatpush3.xpose.msra.mxu1 %v1281_v28  ;;  %1305 = vmatprep.mubr.f32.mxu1 %v149_v35 }
  0xf3   :  { %1308 = vmatprep.subr.mxu1 %v124_v36 }
  0xf5   :  { %1306 = vmatmul.mubr.f32.vlgmr.msra.gmra.mxu1 %v150_v37 }
  0xf6   :  { %1309 = vmatpush3.xpose.msra.mxu1 %v124_v36  ;;  %1310 = vmatprep.mubr.f32.mxu1 %v151_v38 }
  0xf7   :  { %1313 = vmatprep.subr.mxu1 %v1284_v33 }
  0xf9   :  { %1311 = vmatmul.mubr.f32.vlgmr.msra.gmra.mxu1 %v152_v40 }
  0xfa   :  { %1314 = vmatpush3.xpose.msra.mxu1 %v1284_v33  ;;  %1315 = vmatprep.mubr.f32.mxu1 %v153_v41 }
  0xfb   :  { %1318 = vmatprep.subr.mxu1 %v134_v42 }
  0xfd   :  { %1316 = vmatmul.mubr.f32.vlgmr.msra.gmra.mxu1 %v154_v43 }
  0xfe   :  { %1319 = vmatpush3.xpose.msra.mxu1 %v134_v42  ;;  %1320 = vmatprep.mubr.f32.mxu1 %v155_v44 }
  0xff   :  { %1323 = vmatprep.subr.mxu1 %v1287_v39 }
 0x101   :  { %1321 = vmatmul.mubr.f32.vlgmr.msra.gmra.mxu1 %v156_v45 }
 0x102   :  { %1324 = vmatpush3.xpose.msra.mxu1 %v1287_v39  ;;  %1325 = vmatprep.mubr.f32.mxu1 %v157_v46 }
 0x105   :  { %1326 = vmatmul.mubr.f32.vlgmr.msra.gmra.mxu1 %v158_v47 }
 0x1a9   :  { %v1292_v48 = vpop.f32.mrf.mxu1 }
 0x1aa   :  { %v763_v49 = vsel %vm759_vm0, %v1292_v48, -inf }
 0x1ab   :  { %764 = vmax.xlane.f32.xlu0 %v763_v49  ;;  %v225_v50 = vpop.f32.mrf.mxu1 }
 0x1ac   :  { %v760_v52 = vsel %vm759_vm0, %v225_v50, -inf }
 0x1ad   :  { %v1297_v51 = vpop.f32.mrf.mxu1 }
 0x1ae   :  { %v769_v53 = vsel %vm759_vm0, %v1297_v51, -inf }
 0x1af   :  { %761 = vmax.xlane.f32.xlu0 %v760_v52  ;;  %770 = vmax.xlane.f32.xlu1 %v769_v53  ;;  %v300_v54 = vpop.f32.mrf.mxu1 }
 0x1b0   :  { %v766_v56 = vsel %vm759_vm0, %v300_v54, -inf }
 0x1b1   :  { %v1471_v55 = vpop.f32.mrf.mxu1 }
 0x1b2   :  { %v775_v60 = vsel %vm759_vm0, %v1471_v55, -inf }
 0x1b3   :  { %767 = vmax.xlane.f32.xlu1 %v766_v56  ;;  %v1474_v57 = vpop.f32.mrf.mxu1 }
 0x1b4   :  { %v772_v58 = vsel %vm759_vm0, %v1474_v57, -inf }
 0x1b5   :  { %773 = vmax.xlane.f32.xlu0 %v772_v58  ;;  %v1478_v59 = vpop.f32.mrf.mxu1 }
 0x1b6   :  { %v781_v0 = vsel %vm759_vm0, %v1478_v59, -inf }
 0x1b7   :  { %776 = vmax.xlane.f32.xlu1 %v775_v60  ;;  %v1482_v61 = vpop.f32.mrf.mxu1 }
 0x1b8   :  { %v778_v62 = vsel %vm759_vm0, %v1482_v61, -inf }
 0x1b9   :  { %779 = vmax.xlane.f32.xlu0 %v778_v62  ;;  %v1486_v63 = vpop.f32.mrf.mxu1 }
 0x1ba   :  { %v787_v4 = vsel %vm759_vm0, %v1486_v63, -inf }
 0x1bb   :  { %782 = vmax.xlane.f32.xlu1 %v781_v0  ;;  %v1490_v1 = vpop.f32.mrf.mxu1 }
 0x1bc   :  { %v784_v2 = vsel %vm759_vm0, %v1490_v1, -inf }
 0x1bd   :  { %785 = vmax.xlane.f32.xlu0 %v784_v2  ;;  %v1494_v3 = vpop.f32.mrf.mxu1 }
 0x1be   :  { %v793_v8 = vsel %vm759_vm0, %v1494_v3, -inf }
 0x1bf   :  { %788 = vmax.xlane.f32.xlu1 %v787_v4  ;;  %v1498_v5 = vpop.f32.mrf.mxu1 }
 0x1c0   :  { %v790_v6 = vsel %vm759_vm0, %v1498_v5, -inf }
 0x1c1   :  { %791 = vmax.xlane.f32.xlu0 %v790_v6  ;;  %v1502_v7 = vpop.f32.mrf.mxu1 }
 0x1c2   :  { %v799_v12 = vsel %vm759_vm0, %v1502_v7, -inf }
 0x1c3   :  { %794 = vmax.xlane.f32.xlu1 %v793_v8  ;;  %v1506_v9 = vpop.f32.mrf.mxu1 }
 0x1c4   :  { %v796_v10 = vsel %vm759_vm0, %v1506_v9, -inf }
 0x1c5   :  { %797 = vmax.xlane.f32.xlu0 %v796_v10  ;;  %v1510_v11 = vpop.f32.mrf.mxu1 }
 0x1c6   :  { %v805_v15 = vsel %vm759_vm0, %v1510_v11, -inf }
 0x1c7   :  { %800 = vmax.xlane.f32.xlu1 %v799_v12  ;;  %v1514_v13 = vpop.f32.mrf.mxu1 }
 0x1c8   :  { %v802_v14 = vsel %vm759_vm0, %v1514_v13, -inf }
 0x1c9   :  { %803 = vmax.xlane.f32.xlu0 %v802_v14 }
 0x1cb   :  { %806 = vmax.xlane.f32.xlu1 %v805_v15 }
 0x234   :  { %v765_v18 = vpop.xlane.xlu0 %764 }
 0x235   :  { %vm811_vm1 = vcmp.eq.f32.partialorder %v1292_v48, %v765_v18 }
 0x236   :  { %v827_v19 = vsel %vm811_vm1, %v1521_v17, 8 }
 0x237   :  { %v1525_v20 = vsel %vm759_vm0, %v827_v19, 2147483647 }
 0x238   :  { %v762_v21 = vpop.xlane.xlu0 %761  ;;  %v771_v22 = vpop.xlane.xlu1 %770  ;;  %v859_v23 = vshra.s32 %v1525_v20, 16 }
 0x239   :  { %vm810_vm2 = vcmp.eq.f32.partialorder %v225_v50, %v762_v21  ;;  %vm813_vm3 = vcmp.eq.f32.partialorder %v1297_v51, %v771_v22 }
 0x23a   :  { %v826_v24 = vsel %vm810_vm2, %v1521_v17, 8  ;;  %v829_v25 = vsel %vm813_vm3, %v1521_v17, 8  ;;  %v1530_v26 = vcvt.s32.f32 %v859_v23 }
 0x23b   :  { %v1533_v27 = vsel %vm759_vm0, %v826_v24, 2147483647  ;;  %v1536_v28 = vsel %vm759_vm0, %v829_v25, 2147483647 }
 0x23c   :  { %v768_v29 = vpop.xlane.xlu1 %767  ;;  %862 = vmin.xlane.f32.xlu1 %v1530_v26  ;;  %v889_v30 = vshra.s32 %v1536_v28, 16  ;;  %v844_v31 = vshra.s32 %v1533_v27, 16 }
 0x23d   :  { %vm812_vm4 = vcmp.eq.f32.partialorder %v300_v54, %v768_v29 }
 0x23e   :  { %v828_v32 = vsel %vm812_vm4, %v1521_v17, 8  ;;  %v774_v33 = vpop.xlane.xlu0 %773  ;;  %v1542_v34 = vcvt.s32.f32 %v889_v30  ;;  %v1544_v35 = vcvt.s32.f32 %v844_v31 }
 0x23f   :  { %v1547_v36 = vsel %vm759_vm0, %v828_v32, 2147483647  ;;  %vm814_vm5 = vcmp.eq.f32.partialorder %v1474_v57, %v774_v33 }
 0x240   :  { %v830_v37 = vsel %vm814_vm5, %v1521_v17, 8  ;;  %v777_v38 = vpop.xlane.xlu1 %776  ;;  %892 = vmin.xlane.f32.xlu1 %v1542_v34  ;;  %847 = vmin.xlane.f32.xlu0 %v1544_v35  ;;  %v874_v39 = vshra.s32 %v1547_v36, 16 }
 0x241   :  { %v1555_v40 = vsel %vm759_vm0, %v830_v37, 2147483647  ;;  %vm815_vm6 = vcmp.eq.f32.partialorder %v1471_v55, %v777_v38 }
 0x242   :  { %v831_v41 = vsel %vm815_vm6, %v1521_v17, 8  ;;  %v780_v42 = vpop.xlane.xlu0 %779  ;;  %v1559_v43 = vcvt.s32.f32 %v874_v39  ;;  %v904_v44 = vshra.s32 %v1555_v40, 16 }
 0x243   :  { %v1563_v45 = vsel %vm759_vm0, %v831_v41, 2147483647  ;;  %vm816_vm7 = vcmp.eq.f32.partialorder %v1482_v61, %v780_v42 }
 0x244   :  { %v832_v46 = vsel %vm816_vm7, %v1521_v17, 8  ;;  %v783_v47 = vpop.xlane.xlu1 %782  ;;  %877 = vmin.xlane.f32.xlu0 %v1559_v43  ;;  %v919_v48 = vshra.s32 %v1563_v45, 16  ;;  %v1576_v53 = vcvt.s32.f32 %v904_v44 }
 0x245   :  { %v1570_v49 = vsel %vm759_vm0, %v832_v46, 2147483647  ;;  %vm817_vm8 = vcmp.eq.f32.partialorder %v1478_v59, %v783_v47  ;;  %v858_v46 = vand.u32 65535, %v1525_v20  ;;  %v873_v20 = vand.u32 65535, %v1547_v36 }
 0x246   :  { %v833_v50 = vsel %vm817_vm8, %v1521_v17, 8  ;;  %v786_v51 = vpop.xlane.xlu0 %785  ;;  %v1574_v52 = vcvt.s32.f32 %v919_v48  ;;  %v934_v54 = vshra.s32 %v1570_v49, 16 }
 0x247   :  { %v1580_v55 = vsel %vm759_vm0, %v833_v50, 2147483647  ;;  %vm818_vm9 = vcmp.eq.f32.partialorder %v1490_v1, %v786_v51  ;;  %v860_v48 = vcvt.s32.f32 %v858_v46  ;;  %v888_v50 = vand.u32 65535, %v1536_v28 }
 0x248   :  { %v834_v56 = vsel %vm818_vm9, %v1521_v17, 8  ;;  %v789_v57 = vpop.xlane.xlu1 %788  ;;  %922 = vmin.xlane.f32.xlu1 %v1574_v52  ;;  %907 = vmin.xlane.f32.xlu0 %v1576_v53  ;;  %v949_v58 = vshra.s32 %v1580_v55, 16  ;;  %v1594_v0 = vcvt.s32.f32 %v934_v54  ;;  %v843_v51 = vand.u32 65535, %v1533_v27 }
 0x249   :  { %v1588_v59 = vsel %vm759_vm0, %v834_v56, 2147483647  ;;  %vm819_vm10 = vcmp.eq.f32.partialorder %v1486_v63, %v789_v57 }
 0x24a   :  { %v835_v60 = vsel %vm819_vm10, %v1521_v17, 8  ;;  %v792_v61 = vpop.xlane.xlu0 %791  ;;  %v1592_v62 = vcvt.s32.f32 %v949_v58  ;;  %v964_v1 = vshra.s32 %v1588_v59, 16  ;;  %v890_v58 = vcvt.s32.f32 %v888_v50 }
 0x24b   :  { %v1598_v2 = vsel %vm759_vm0, %v835_v60, 2147483647  ;;  %vm820_vm11 = vcmp.eq.f32.partialorder %v1498_v5, %v792_v61  ;;  %v845_v60 = vcvt.s32.f32 %v843_v51  ;;  %v875_v61 = vcvt.s32.f32 %v873_v20 }
 0x24c   :  { %v836_v4 = vsel %vm820_vm11, %v1521_v17, 8  ;;  %v795_v6 = vpop.xlane.xlu1 %794  ;;  %952 = vmin.xlane.f32.xlu1 %v1592_v62  ;;  %937 = vmin.xlane.f32.xlu0 %v1594_v0  ;;  %v979_v63 = vshra.s32 %v1598_v2, 16  ;;  %v1612_v5 = vcvt.s32.f32 %v964_v1  ;;  %v918_v1 = vand.u32 65535, %v1563_v45 }
 0x24d   :  { %v1606_v8 = vsel %vm759_vm0, %v836_v4, 2147483647  ;;  %vm821_vm12 = vcmp.eq.f32.partialorder %v1494_v3, %v795_v6  ;;  %v903_v4 = vand.u32 65535, %v1555_v40 }
 0x24e   :  { %v837_v10 = vsel %vm821_vm12, %v1521_v17, 8  ;;  %v798_v12 = vpop.xlane.xlu0 %797  ;;  %v1610_v14 = vcvt.s32.f32 %v979_v63  ;;  %v994_v15 = vshra.s32 %v1606_v8, 16 }
 0x24f   :  { %v1616_v18 = vsel %vm759_vm0, %v837_v10, 2147483647  ;;  %vm822_vm13 = vcmp.eq.f32.partialorder %v1506_v9, %v798_v12  ;;  %v905_v63 = vcvt.s32.f32 %v903_v4  ;;  %v948_v10 = vand.u32 65535, %v1580_v55 }
 0x250   :  { %v838_v19 = vsel %vm822_vm13, %v1521_v17, 8  ;;  %v801_v21 = vpop.xlane.xlu1 %800  ;;  %982 = vmin.xlane.f32.xlu1 %v1610_v14  ;;  %967 = vmin.xlane.f32.xlu0 %v1612_v5  ;;  %v1009_v3 = vshra.s32 %v1616_v18, 16  ;;  %v1630_v9 = vcvt.s32.f32 %v994_v15  ;;  %v933_v12 = vand.u32 65535, %v1570_v49 }
 0x251   :  { %v1624_v22 = vsel %vm759_vm0, %v838_v19, 2147483647  ;;  %vm823_vm14 = vcmp.eq.f32.partialorder %v1502_v7, %v801_v21  ;;  %v950_v19 = vcvt.s32.f32 %v948_v10  ;;  %v978_v55 = vand.u32 65535, %v1598_v2 }
 0x252   :  { %v839_v23 = vsel %vm823_vm14, %v1521_v17, 8  ;;  %v804_v24 = vpop.xlane.xlu0 %803  ;;  %v1628_v25 = vcvt.s32.f32 %v1009_v3  ;;  %v1024_v29 = vshra.s32 %v1624_v22, 16  ;;  %v935_v21 = vcvt.s32.f32 %v933_v12 }
 0x253   :  { %v1634_v30 = vsel %vm759_vm0, %v839_v23, 2147483647  ;;  %vm824_vm15 = vcmp.eq.f32.partialorder %v1514_v13, %v804_v24  ;;  %v963_v49 = vand.u32 65535, %v1588_v59  ;;  %v980_v24 = vcvt.s32.f32 %v978_v55 }
 0x254   :  { %v840_v31 = vsel %vm824_vm15, %v1521_v17, 8  ;;  %1012 = vmin.xlane.f32.xlu1 %v1628_v25  ;;  %v807_v32 = vpop.xlane.xlu1 %806  ;;  %997 = vmin.xlane.f32.xlu0 %v1630_v9  ;;  %v1039_v7 = vshra.s32 %v1634_v30, 16  ;;  %v1648_v39 = vcvt.s32.f32 %v1024_v29  ;;  %v1008_v2 = vand.u32 65535, %v1616_v18 }
 0x255   :  { %v1642_v33 = vsel %vm759_vm0, %v840_v31, 2147483647  ;;  %vm825_vm1 = vcmp.eq.f32.partialorder %v1510_v11, %v807_v32  ;;  %v965_v29 = vcvt.s32.f32 %v963_v49  ;;  %v993_v59 = vand.u32 65535, %v1606_v8 }
 0x256   :  { %v841_v37 = vsel %vm825_vm1, %v1521_v17, 8  ;;  %v1646_v38 = vcvt.s32.f32 %v1039_v7  ;;  %v1054_v13 = vshra.s32 %v1642_v33, 16  ;;  %v1010_v7 = vcvt.s32.f32 %v1008_v2 }
 0x257   :  { %v1652_v41 = vsel %vm759_vm0, %v841_v37, 2147483647  ;;  %v995_v37 = vcvt.s32.f32 %v993_v59  ;;  %v1038_v18 = vand.u32 65535, %v1634_v30  ;;  %v1023_v8 = vand.u32 65535, %v1624_v22 }
 0x258   :  { %1042 = vmin.xlane.f32.xlu1 %v1646_v38  ;;  %1027 = vmin.xlane.f32.xlu0 %v1648_v39  ;;  %v1069_v42 = vshra.s32 %v1652_v41, 16  ;;  %v1659_v11 = vcvt.s32.f32 %v1054_v13  ;;  %v1068_v30 = vand.u32 65535, %v1652_v41  ;;  %v1053_v22 = vand.u32 65535, %v1642_v33 }
 0x259   :  { %v1040_v46 = vcvt.s32.f32 %v1038_v18  ;;  %v1745_v41 = vshrl.u32 %v808_v16, 7  ;;  %v1093_v12 = vadd.s32 4294967280, %v1521_v17  ;;  %v1114_v59 = vadd.s32 4294967256, %v1521_v17 }
 0x25a   :  { %v1657_v44 = vcvt.s32.f32 %v1069_v42 }
 0x25c   :  { %1072 = vmin.xlane.f32.xlu1 %v1657_v44  ;;  %1057 = vmin.xlane.f32.xlu0 %v1659_v11 }
 0x2c5   :  { %v1664_v47 = vpop.xlane.xlu1 %862 }
 0x2c6   :  { %vm864_vm0 = vcmp.eq.f32.partialorder %v1530_v26, %v1664_v47 }
 0x2c7   :  { %v865_v54 = vsel %vm864_vm0, %v860_v48, inf  ;;  %v1025_v48 = vcvt.s32.f32 %v1023_v8  ;;  %vm1091_vm0 = vcmask 130112   ;;  %v1128_v8 = vadd.s32 4294967240, %v1521_v17 }
 0x2c8   :  { %866 = vmin.xlane.f32.xlu1 %v865_v54  ;;  %v1070_v54 = vcvt.s32.f32 %v1068_v30 }
 0x2c9   :  { %v1670_v56 = vpop.xlane.xlu1 %892  ;;  %v1672_v57 = vpop.xlane.xlu0 %847 }
 0x2ca   :  { %vm894_vm2 = vcmp.eq.f32.partialorder %v1542_v34, %v1670_v56  ;;  %vm849_vm3 = vcmp.eq.f32.partialorder %v1544_v35, %v1672_v57  ;;  %v920_v35 = vcvt.s32.f32 %v918_v1  ;;  %v899_v20 = vcvt.f32.s32 %v1670_v56 }
 0x2cb   :  { %v895_v27 = vsel %vm894_vm2, %v890_v58, inf  ;;  %v850_v28 = vsel %vm849_vm3, %v845_v60, inf  ;;  %v1055_v58 = vcvt.s32.f32 %v1053_v22  ;;  %v1086_v60 = vadd.s32 4294967288, %v1521_v17 }
 0x2cc   :  { %896 = vmin.xlane.f32.xlu1 %v895_v27  ;;  %851 = vmin.xlane.f32.xlu0 %v850_v28  ;;  %v854_v27 = vcvt.f32.s32 %v1672_v57  ;;  %v900_v56 = vshll.u32 %v899_v20, 16  ;;  %vm1098_vm2 = vcmask 195712   ;;  %vm1105_vm3 = vcmask 261312  }
 0x2cd   :  { %v1679_v26 = vpop.xlane.xlu0 %877 }
 0x2ce   :  { %vm879_vm4 = vcmp.eq.f32.partialorder %v1559_v43, %v1679_v26 }
 0x2cf   :  { %v880_v36 = vsel %vm879_vm4, %v875_v61, inf  ;;  %vm1112_vm4 = vcmask 326912  }
 0x2d0   :  { %881 = vmin.xlane.f32.xlu0 %v880_v36  ;;  %v1089_v36 = vsub.s32 %v1086_v60, %v1745_v41 }
 0x2d1   :  { %v1685_v34 = vpop.xlane.xlu1 %922  ;;  %v1687_v6 = vpop.xlane.xlu0 %907 }
 0x2d2   :  { %vm924_vm5 = vcmp.eq.f32.partialorder %v1574_v52, %v1685_v34  ;;  %vm909_vm6 = vcmp.eq.f32.partialorder %v1576_v53, %v1687_v6  ;;  %v914_v1 = vcvt.f32.s32 %v1687_v6  ;;  %v1084_v6 = vsub.s32 %v1521_v17, %v1745_v41 }
 0x2d3   :  { %v925_v40 = vsel %vm924_vm5, %v920_v35, inf  ;;  %v910_v43 = vsel %vm909_vm6, %v905_v63, inf  ;;  %v1100_v35 = vadd.s32 4294967272, %v1521_v17  ;;  %v855_v63 = vshll.u32 %v854_v27, 16 }
 0x2d4   :  { %926 = vmin.xlane.f32.xlu1 %v925_v40  ;;  %911 = vmin.xlane.f32.xlu0 %v910_v43  ;;  %vm1119_vm5 = vcmask 392512   ;;  %vm1126_vm6 = vcmask 458112  }
 0x2d5   :  { %v1695_v45 = vpop.xlane.xlu1 %952  ;;  %v1697_v15 = vpop.xlane.xlu0 %937 }
 0x2d6   :  { %vm954_vm7 = vcmp.eq.f32.partialorder %v1592_v62, %v1695_v45  ;;  %vm939_vm8 = vcmp.eq.f32.partialorder %v1594_v0, %v1697_v15  ;;  %v959_v4 = vcvt.f32.s32 %v1695_v45  ;;  %v944_v16 = vcvt.f32.s32 %v1697_v15 }
 0x2d7   :  { %v955_v52 = vsel %vm954_vm7, %v950_v19, inf  ;;  %v940_v53 = vsel %vm939_vm8, %v935_v21, inf  ;;  %v915_v45 = vshll.u32 %v914_v1, 16  ;;  %v1142_v1 = vadd.s32 4294967224, %v1521_v17 }
 0x2d8   :  { %956 = vmin.xlane.f32.xlu1 %v955_v52  ;;  %941 = vmin.xlane.f32.xlu0 %v940_v53  ;;  %v960_v19 = vshll.u32 %v959_v4, 16  ;;  %v945_v55 = vshll.u32 %v944_v16, 16  ;;  %v1103_v52 = vsub.s32 %v1100_v35, %v1745_v41  ;;  %v1135_v4 = vadd.s32 4294967232, %v1521_v17 }
 0x2d9   :  { %v1705_v3 = vpop.xlane.xlu1 %982  ;;  %v1707_v23 = vpop.xlane.xlu0 %967  ;;  %vm1133_vm7 = vcmask 523712   ;;  %vm1140_vm8 = vcmask 589312  }
 0x2da   :  { %vm984_vm9 = vcmp.eq.f32.partialorder %v1610_v14, %v1705_v3  ;;  %vm969_vm10 = vcmp.eq.f32.partialorder %v1612_v5, %v1707_v23  ;;  %v989_v15 = vcvt.f32.s32 %v1705_v3  ;;  %v974_v49 = vcvt.f32.s32 %v1707_v23 }
 0x2db   :  { %v985_v62 = vsel %vm984_vm9, %v980_v24, inf  ;;  %v970_v0 = vsel %vm969_vm10, %v965_v29, inf  ;;  %v1096_v29 = vsub.s32 %v1093_v12, %v1745_v41  ;;  %v1107_v3 = vadd.s32 4294967264, %v1521_v17 }
 0x2dc   :  { %986 = vmin.xlane.f32.xlu1 %v985_v62  ;;  %971 = vmin.xlane.f32.xlu0 %v970_v0  ;;  %v1156_v12 = vadd.s32 4294967208, %v1521_v17  ;;  %vm1147_vm9 = vcmask 654912   ;;  %vm1154_vm10 = vcmask 720512  }
 0x2dd   :  { %v1715_v31 = vpop.xlane.xlu1 %1012  ;;  %v1717_v32 = vpop.xlane.xlu0 %997 }
 0x2de   :  { %vm1014_vm11 = vcmp.eq.f32.partialorder %v1628_v25, %v1715_v31  ;;  %vm999_vm12 = vcmp.eq.f32.partialorder %v1630_v9, %v1717_v32  ;;  %v1019_v24 = vcvt.f32.s32 %v1715_v31  ;;  %v1004_v18 = vcvt.f32.s32 %v1717_v32 }
 0x2df   :  { %v1015_v14 = vsel %vm1014_vm11, %v1010_v7, inf  ;;  %v1000_v5 = vsel %vm999_vm12, %v995_v37, inf  ;;  %v990_v37 = vshll.u32 %v989_v15, 16  ;;  %v1110_v32 = vsub.s32 %v1107_v3, %v1745_v41 }
 0x2e0   :  { %1016 = vmin.xlane.f32.xlu1 %v1015_v14  ;;  %1001 = vmin.xlane.f32.xlu0 %v1000_v5  ;;  %v975_v14 = vshll.u32 %v974_v49, 16  ;;  %v1163_v3 = vadd.s32 4294967200, %v1521_v17  ;;  %vm1161_vm11 = vcmask 786112   ;;  %vm1168_vm12 = vcmask 851712  }
 0x2e1   :  { %v1725_v13 = vpop.xlane.xlu1 %1042  ;;  %v1727_v42 = vpop.xlane.xlu0 %1027 }
 0x2e2   :  { %vm1044_vm13 = vcmp.eq.f32.partialorder %v1646_v38, %v1725_v13  ;;  %vm1029_vm14 = vcmp.eq.f32.partialorder %v1648_v39, %v1727_v42  ;;  %v869_v39 = vcvt.f32.s32 %v1664_v47 }
 0x2e3   :  { %v1045_v25 = vsel %vm1044_vm13, %v1040_v46, inf  ;;  %v1030_v9 = vsel %vm1029_vm14, %v1025_v48, inf  ;;  %v1769_v46 = vshll.u32 %v1019_v24, 16  ;;  %v1117_v48 = vsub.s32 %v1114_v59, %v1745_v41 }
 0x2e4   :  { %1046 = vmin.xlane.f32.xlu1 %v1045_v25  ;;  %1031 = vmin.xlane.f32.xlu0 %v1030_v9  ;;  %v870_v47 = vshll.u32 %v869_v39, 16  ;;  %v1121_v25 = vadd.s32 4294967248, %v1521_v17  ;;  %v1131_v39 = vsub.s32 %v1128_v8, %v1745_v41  ;;  %vm1175_vm13 = vcmask 917312  }
 0x2e5   :  { %v1735_v50 = vpop.xlane.xlu1 %1072  ;;  %v1737_v51 = vpop.xlane.xlu0 %1057  ;;  %vm1182_vm14 = vcmask 982912  }
 0x2e6   :  { %vm1074_vm15 = vcmp.eq.f32.partialorder %v1657_v44, %v1735_v50  ;;  %vm1059_vm1 = vcmp.eq.f32.partialorder %v1659_v11, %v1737_v51  ;;  %v884_v44 = vcvt.f32.s32 %v1679_v26  ;;  %v929_v11 = vcvt.f32.s32 %v1685_v34 }
 0x2e7   :  { %v1075_v33 = vsel %vm1074_vm15, %v1070_v54, inf  ;;  %v1060_v38 = vsel %vm1059_vm1, %v1055_v58, inf  ;;  %vm1189_vm15 = vcmask 1048512  }
 0x2e8   :  { %1076 = vmin.xlane.f32.xlu1 %v1075_v33  ;;  %1061 = vmin.xlane.f32.xlu0 %v1060_v38  ;;  %v885_v57 = vshll.u32 %v884_v44, 16  ;;  %v930_v34 = vshll.u32 %v929_v11, 16  ;;  %v1005_v33 = vshll.u32 %v1004_v18, 16  ;;  %v1124_v11 = vsub.s32 %v1121_v25, %v1745_v41 }
 0x351   :  { %v867_v28 = vpop.xlane.xlu1 %866 }
 0x352   :  { %v868_v61 = vcvt.f32.s32 %v867_v28 }
 0x354   :  { %v871_v40 = vadd.s32 %v870_v47, %v868_v61 }
 0x355   :  { %v897_v10 = vpop.xlane.xlu1 %896  ;;  %v852_v26 = vpop.xlane.xlu0 %851 }
 0x356   :  { %v853_v43 = vcvt.f32.s32 %v852_v26  ;;  %v898_v21 = vcvt.f32.s32 %v897_v10  ;;  %v1090_v62 = vrot.slane %v871_v40, %v1089_v36  ;;  %v1145_v40 = vsub.s32 %v1142_v1, %v1745_v41 }
 0x358   :  { %v856_v53 = vadd.s32 %v855_v63, %v853_v43  ;;  %v901_v23 = vadd.s32 %v900_v56, %v898_v21  ;;  %v1049_v56 = vcvt.f32.s32 %v1725_v13  ;;  %v1034_v63 = vcvt.f32.s32 %v1727_v42 }
 0x359   :  { %v882_v2 = vpop.xlane.xlu0 %881  ;;  %v1138_v43 = vsub.s32 %v1135_v4, %v1745_v41  ;;  %v1149_v13 = vadd.s32 4294967216, %v1521_v17 }
 0x35a   :  { %v1085_v0 = vrot.slane %v856_v53, %v1084_v6  ;;  %v883_v7 = vcvt.f32.s32 %v882_v2  ;;  %v1104_v38 = vrot.slane %v901_v23, %v1103_v52  ;;  %v1050_v52 = vshll.u32 %v1049_v56, 16 }
 0x35b   :  { %v1035_v53 = vshll.u32 %v1034_v63, 16  ;;  %v1159_v2 = vsub.s32 %v1156_v12, %v1745_v41 }
 0x35c   :  { %v1092_v5 = vsel %vm1091_vm0, %v1090_v62, %v1085_v0  ;;  %v886_v31 = vadd.s32 %v885_v57, %v883_v7  ;;  %v1152_v0 = vsub.s32 %v1149_v13, %v1745_v41 }
 0x35d   :  { %v927_v30 = vpop.xlane.xlu1 %926  ;;  %v912_v22 = vpop.xlane.xlu0 %911 }
 0x35e   :  { %v1097_v9 = vrot.slane %v886_v31, %v1096_v29  ;;  %v928_v54 = vcvt.f32.s32 %v927_v30  ;;  %v913_v58 = vcvt.f32.s32 %v912_v22  ;;  %v1079_v31 = vcvt.f32.s32 %v1735_v50 }
 0x35f   :  { %v1177_v50 = vadd.s32 4294967184, %v1521_v17 }
 0x360   :  { %v1099_v60 = vsel %vm1098_vm2, %v1097_v9, %v1092_v5  ;;  %v931_v20 = vadd.s32 %v930_v34, %v928_v54  ;;  %v916_v27 = vadd.s32 %v915_v45, %v913_v58  ;;  %v1166_v54 = vsub.s32 %v1163_v3, %v1745_v41 }
 0x361   :  { %v1106_v44 = vsel %vm1105_vm3, %v1104_v38, %v1099_v60  ;;  %v957_v28 = vpop.xlane.xlu1 %956  ;;  %v942_v61 = vpop.xlane.xlu0 %941  ;;  %v1184_v58 = vadd.s32 4294967176, %v1521_v17  ;;  %v1180_v1 = vsub.s32 %v1177_v50, %v1745_v41 }
 0x362   :  { %v1118_v47 = vrot.slane %v931_v20, %v1117_v48  ;;  %v1111_v16 = vrot.slane %v916_v27, %v1110_v32  ;;  %v958_v36 = vcvt.f32.s32 %v957_v28  ;;  %v943_v35 = vcvt.f32.s32 %v942_v61 }
 0x363   :  { %v1080_v20 = vshll.u32 %v1079_v31, 16 }
 0x364   :  { %v1113_v57 = vsel %vm1112_vm4, %v1111_v16, %v1106_v44  ;;  %v961_v10 = vadd.s32 %v960_v19, %v958_v36  ;;  %v946_v26 = vadd.s32 %v945_v55, %v943_v35  ;;  %v1170_v19 = vadd.s32 4294967192, %v1521_v17 }
 0x365   :  { %v1120_v34 = vsel %vm1119_vm5, %v1118_v47, %v1113_v57  ;;  %v987_v6 = vpop.xlane.xlu1 %986  ;;  %v972_v45 = vpop.xlane.xlu0 %971 }
 0x366   :  { %v1132_v15 = vrot.slane %v961_v10, %v1131_v39  ;;  %v1125_v42 = vrot.slane %v946_v26, %v1124_v11  ;;  %v988_v21 = vcvt.f32.s32 %v987_v6  ;;  %v973_v49 = vcvt.f32.s32 %v972_v45 }
 0x367   :  { %v1187_v11 = vsub.s32 %v1184_v58, %v1745_v41 }
 0x368   :  { %v1127_v55 = vsel %vm1126_vm6, %v1125_v42, %v1120_v34  ;;  %v991_v24 = vadd.s32 %v990_v37, %v988_v21  ;;  %v976_v29 = vadd.s32 %v975_v14, %v973_v49  ;;  %v1064_v37 = vcvt.f32.s32 %v1737_v51 }
 0x369   :  { %v1134_v59 = vsel %vm1133_vm7, %v1132_v15, %v1127_v55  ;;  %v1017_v62 = vpop.xlane.xlu1 %1016  ;;  %v1002_v7 = vpop.xlane.xlu0 %1001  ;;  %v1173_v14 = vsub.s32 %v1170_v19, %v1745_v41 }
 0x36a   :  { %v1146_v18 = vrot.slane %v991_v24, %v1145_v40  ;;  %v1139_v23 = vrot.slane %v976_v29, %v1138_v43  ;;  %v1018_v8 = vcvt.f32.s32 %v1017_v62  ;;  %v1003_v5 = vcvt.f32.s32 %v1002_v7 }
 0x36b   :  { %v1065_v27 = vshll.u32 %v1064_v37, 16 }
 0x36c   :  { %v1141_v48 = vsel %vm1140_vm8, %v1139_v23, %v1134_v59  ;;  %v1021_v30 = vadd.s32 %v1769_v46, %v1018_v8  ;;  %v1006_v22 = vadd.s32 %v1005_v33, %v1003_v5 }
 0x36d   :  { %v1148_v25 = vsel %vm1147_vm9, %v1146_v18, %v1141_v48  ;;  %v1047_v9 = vpop.xlane.xlu1 %1046  ;;  %v1032_v32 = vpop.xlane.xlu0 %1031 }
 0x36e   :  { %v1160_v51 = vrot.slane %v1021_v30, %v1159_v2  ;;  %v1153_v38 = vrot.slane %v1006_v22, %v1152_v0  ;;  %v1048_v39 = vcvt.f32.s32 %v1047_v9  ;;  %v1033_v60 = vcvt.f32.s32 %v1032_v32 }
 0x370   :  { %v1155_v46 = vsel %vm1154_vm10, %v1153_v38, %v1148_v25  ;;  %v1051_v33 = vadd.s32 %v1050_v52, %v1048_v39  ;;  %v1036_v44 = vadd.s32 %v1035_v53, %v1033_v60 }
 0x371   :  { %v1162_v28 = vsel %vm1161_vm11, %v1160_v51, %v1155_v46  ;;  %v1077_v61 = vpop.xlane.xlu1 %1076  ;;  %v1062_v17 = vpop.xlane.xlu0 %1061 }
 0x372   :  { %v1174_v4 = vrot.slane %v1051_v33, %v1173_v14  ;;  %v1167_v47 = vrot.slane %v1036_v44, %v1166_v54  ;;  %v1078_v16 = vcvt.f32.s32 %v1077_v61  ;;  %v1063_v36 = vcvt.f32.s32 %v1062_v17 }
 0x374   :  { %v1169_v35 = vsel %vm1168_vm12, %v1167_v47, %v1162_v28  ;;  %v1081_v56 = vadd.s32 %v1080_v20, %v1078_v16  ;;  %v1066_v63 = vadd.s32 %v1065_v27, %v1063_v36 }
 0x375   :  { %v1176_v57 = vsel %vm1175_vm13, %v1174_v4, %v1169_v35 }
 0x376   :  { %v1188_v10 = vrot.slane %v1081_v56, %v1187_v11  ;;  %v1181_v26 = vrot.slane %v1066_v63, %v1180_v1 }
 0x378   :  { %v1183_v12 = vsel %vm1182_vm14, %v1181_v26, %v1176_v57 }
 0x379   :  { %v1190_v34 = vsel %vm1189_vm15, %v1188_v10, %v1183_v12 }
 0x37a   :  { %1191 = vst [vmem:[%s1812_s3] sm:$0x1] %v1190_v34 }

</bundles_post_ra>
